<compile_context>
chip_gen: v6e
topology: v6e:2x2x1
jax: 0.10.0
libtpu: 0.0.40
codegen_flags: <defaults>
</compile_context>

<pallas_src>
import functools

import jax
import jax.numpy as jnp
from jax import lax
from jax.experimental import pallas as pl
from jax.experimental.pallas import tpu as pltpu

EPS = 1e-6

# Sobel stencils (what the PyTorch module builds in __init__); used by the
# pure-JAX reference only -- the kernel uses the separable decomposition.
SOBEL_X = ((-1.0, 0.0, 1.0),
           (-2.0, 0.0, 2.0),
           (-1.0, 0.0, 1.0))
SOBEL_Y = ((-1.0, -2.0, -1.0),
           (0.0, 0.0, 0.0),
           (1.0, 2.0, 1.0))


def _gradient_loss_kernel(out_ref, tgt_ref, o_top_ref, o_bot_ref,
                          t_top_ref, t_bot_ref, partial_ref,
                          *, h_real, tile_h, mask_padded):
    # out_ref / tgt_ref     : (1, C, TH, W)   auto-pipelined row bands
    # *_top_ref / *_bot_ref : (1, 1, C, 1, W) auto-pipelined 1-row halos
    #                         (zero rows at the true image borders)
    # partial_ref           : (1, 1, 8, 128)  lane-dense per-band partial sum
    C = out_ref.shape[1]
    TH = out_ref.shape[2]
    W = out_ref.shape[3]
    j = pl.program_id(1)

    # Minimal-shape edge masks; jnp.where broadcasts them to the band shape.
    row = lax.broadcasted_iota(jnp.int32, (1, TH, 1), 1)
    col = lax.broadcasted_iota(jnp.int32, (1, 1, W), 2)
    is_top_row = row == 0
    is_bot_row = row == TH - 1
    is_left_col = col == 0
    is_right_col = col == W - 1

    def sobel_mag(band_ref, top_ref, bot_ref):
        x = band_ref[0].astype(jnp.float32)        # (C, TH, W)
        top = top_ref[0, 0].astype(jnp.float32)    # (C, 1, W)
        bot = bot_ref[0, 0].astype(jnp.float32)    # (C, 1, W)

        # Rows y-1 / y+1 via sublane rolls; band-edge rows patched with halos.
        up = jnp.where(is_top_row, top, pltpu.roll(x, 1, axis=1))
        down = jnp.where(is_bot_row, bot, pltpu.roll(x, TH - 1, axis=1))

        v1 = up + 2.0 * x + down      # vertical [1, 2, 1]  (smooth)
        v2 = down - up                # vertical [-1, 0, 1] (diff)

        # Columns x-1 / x+1 via lane rolls (XLU); zero padding at image edges.
        v1_l = jnp.where(is_left_col, 0.0, pltpu.roll(v1, 1, axis=2))
        v1_r = jnp.where(is_right_col, 0.0, pltpu.roll(v1, W - 1, axis=2))
        v2_l = jnp.where(is_left_col, 0.0, pltpu.roll(v2, 1, axis=2))
        v2_r = jnp.where(is_right_col, 0.0, pltpu.roll(v2, W - 1, axis=2))

        gx = v1_r - v1_l              # horizontal [-1, 0, 1] on smoothed rows
        gy = v2_l + 2.0 * v2 + v2_r   # horizontal [1, 2, 1]  on diffed rows
        return jnp.sqrt(gx * gx + gy * gy + EPS)

    diff = jnp.abs(sobel_mag(out_ref, o_top_ref, o_bot_ref)
                   - sobel_mag(tgt_ref, t_top_ref, t_bot_ref))

    if mask_padded:
        # Rows appended by the wrapper to make H a multiple of 8 must not
        # contribute to the sum.
        global_row = j * tile_h + row             # (1, TH, 1)
        diff = jnp.where(global_row < h_real, diff, 0.0)

    partial = jnp.sum(diff)
    # Lane-dense (8, 128) per-band partial; the wrapper reads [0, 0].
    partial_ref[...] = jnp.full(partial_ref.shape, partial, jnp.float32)


def _band_halos(x, tile_h):
    """Per-band 1-row halos, shape (B, nb, C, 1, W): the image row just above /
    below each band, with a zero row at the true image borders."""
    B, C, Hp, W = x.shape
    nb = Hp // tile_h
    zero = jnp.zeros((B, C, 1, W), x.dtype)
    if nb > 1:
        top_rows = x[:, :, tile_h - 1:Hp - 1:tile_h, :]   # rows j*TH - 1, j>=1
        bot_rows = x[:, :, tile_h:Hp:tile_h, :]           # rows (j+1)*TH, j<nb-1
        top = jnp.concatenate([zero, top_rows], axis=2)   # (B, C, nb, W)
        bot = jnp.concatenate([bot_rows, zero], axis=2)   # (B, C, nb, W)
    else:
        top, bot = zero, zero
    top = jnp.transpose(top, (0, 2, 1, 3))[:, :, :, None, :]  # (B, nb, C, 1, W)
    bot = jnp.transpose(bot, (0, 2, 1, 3))[:, :, :, None, :]
    return top, bot


def _pick_tile_h(h_pad, batch, channels, width, itemsize,
                 working_set_budget=32 << 20):
    """Largest multiple-of-8 divisor of h_pad whose per-step VMEM working set
    (2 inputs x 2 pipeline buffers + ~6 band-sized f32 temporaries) fits the
    budget. 32 MiB keeps the total comfortably under v7x's 64 MiB VMEM while
    amortizing the ~0.35 us/step grid overhead."""
    bytes_per_row = channels * width * (4 * itemsize + 6 * 4)
    max_rows = max(8, (working_set_budget // max(1, bytes_per_row)) // 8 * 8)
    divisors = [d for d in range(8, h_pad + 1, 8) if h_pad % d == 0]
    if not divisors:
        return h_pad
    fitting = [d for d in divisors if d <= max_rows] or divisors[:1]
    tile = fitting[-1]
    # v7x has 2 TensorCores and the "parallel" grid is sharded across them;
    # with batch == 1 make sure there are at least 2 bands when possible.
    if batch == 1 and h_pad // tile < 2:
        multi = [d for d in fitting if h_pad // d >= 2]
        if multi:
            tile = multi[-1]
    return tile


def gradient_loss(output, target, *, tile_h=None,
                  vmem_limit_bytes=48 * 1024 * 1024):
    """Pallas equivalent of GradientLoss.forward(output, target)."""
    assert output.shape == target.shape, "output/target shapes must match"
    B, C, H, W = output.shape

    # Keep the row-band sublane tiling: pad H up to a multiple of 8 with zero
    # rows; padded rows are masked out of the sum inside the kernel.
    H_pad = (H + 7) // 8 * 8
    if H_pad != H:
        pad = ((0, 0), (0, 0), (0, H_pad - H), (0, 0))
        output_p = jnp.pad(output, pad)
        target_p = jnp.pad(target, pad)
    else:
        output_p, target_p = output, target

    if tile_h is None:
        tile_h = _pick_tile_h(H_pad, B, C, W, output.dtype.itemsize)
    assert H_pad % tile_h == 0 and tile_h % 8 == 0, \
        "tile_h must be a multiple of 8 dividing the padded H"
    nb = H_pad // tile_h

    # 1-row top/bottom halos for every band, gathered once outside the kernel
    # and auto-pipelined (no manual DMA start/wait on the critical path).
    o_top, o_bot = _band_halos(output_p, tile_h)
    t_top, t_bot = _band_halos(target_p, tile_h)

    band_spec = pl.BlockSpec((1, C, tile_h, W), lambda b, j: (b, 0, j, 0))
    halo_spec = pl.BlockSpec((1, 1, C, 1, W), lambda b, j: (b, j, 0, 0, 0))

    kernel = functools.partial(_gradient_loss_kernel, h_real=H, tile_h=tile_h,
                               mask_padded=(H_pad != H))

    partials = pl.pallas_call(
        kernel,
        out_shape=jax.ShapeDtypeStruct((B, nb, 8, 128), jnp.float32),
        grid_spec=pltpu.PrefetchScalarGridSpec(
            num_scalar_prefetch=0,
            grid=(B, nb),
            in_specs=[band_spec, band_spec,
                      halo_spec, halo_spec, halo_spec, halo_spec],
            out_specs=pl.BlockSpec((1, 1, 8, 128), lambda b, j: (b, j, 0, 0)),
        ),
        compiler_params=pltpu.CompilerParams(
            dimension_semantics=("parallel", "parallel"),
            vmem_limit_bytes=vmem_limit_bytes),
    )(output_p, target_p, o_top, o_bot, t_top, t_bot)

    total = jnp.sum(partials[:, :, 0, 0])
    return total / (B * C * H * W)


def _reference_loss(output, target):
    """Pure-JAX direct 9-tap reference mirroring the PyTorch forward."""
    output = output.astype(jnp.float32)
    target = target.astype(jnp.float32)

    def sobel_mag(x):
        H, W = x.shape[2], x.shape[3]
        xp = jnp.pad(x, ((0, 0), (0, 0), (1, 1), (1, 1)))
        gx = jnp.zeros_like(x)
        gy = jnp.zeros_like(x)
        for dy in range(3):
            for dx in range(3):
                win = xp[:, :, dy:dy + H, dx:dx + W]
                gx = gx + SOBEL_X[dy][dx] * win
                gy = gy + SOBEL_Y[dy][dx] * win
        return jnp.sqrt(gx * gx + gy * gy + EPS)

    return jnp.mean(jnp.abs(sobel_mag(output) - sobel_mag(target)))


if __name__ == "__main__":
    import numpy as np

    key = jax.random.PRNGKey(0)
    k1, k2, k3, k4 = jax.random.split(key, 4)

    # groups=3 in the module fixes channels to 3; W=128 keeps the lane axis dense.
    shape = (2, 3, 16, 128)
    output = jax.random.normal(k1, shape, dtype=jnp.float32)
    target = jax.random.normal(k2, shape, dtype=jnp.float32)

    # Multi-band path: row-band tiling + auto-pipelined 1-row halos between bands.
    loss = jax.block_until_ready(gradient_loss(output, target, tile_h=8))
    ref = jax.block_until_ready(_reference_loss(output, target))
    np.testing.assert_allclose(np.asarray(loss), np.asarray(ref),
                               rtol=1e-4, atol=1e-5)

    # bf16 inputs (auto tile): halves HBM traffic; kernel upcasts to f32.
    out_bf = output.astype(jnp.bfloat16)
    tgt_bf = target.astype(jnp.bfloat16)
    loss_bf = jax.block_until_ready(gradient_loss(out_bf, tgt_bf))
    ref_bf = jax.block_until_ready(_reference_loss(out_bf, tgt_bf))
    np.testing.assert_allclose(np.asarray(loss_bf), np.asarray(ref_bf),
                               rtol=1e-4, atol=1e-4)

    # H not a multiple of 8 (B=1): wrapper zero-pads rows, kernel masks them out.
    shape2 = (1, 3, 12, 128)
    out2 = jax.random.normal(k3, shape2, dtype=jnp.float32)
    tgt2 = jax.random.normal(k4, shape2, dtype=jnp.float32)
    loss2 = jax.block_until_ready(gradient_loss(out2, tgt2))
    ref2 = jax.block_until_ready(_reference_loss(out2, tgt2))
    np.testing.assert_allclose(np.asarray(loss2), np.asarray(ref2),
                               rtol=1e-4, atol=1e-5)

    print("KERNEL_OK")
</pallas_src>

<mosaic_0001>
module attributes {stable_mosaic.version = 11 : i64} {
  func.func @_gradient_loss_kernel(%arg0: i32, %arg1: i32, %arg2: memref<1x3x8x128xf32, #tpu.memory_space<vmem>>, %arg3: memref<1x3x8x128xf32, #tpu.memory_space<vmem>>, %arg4: memref<1x1x3x1x128xf32, #tpu.memory_space<vmem>>, %arg5: memref<1x1x3x1x128xf32, #tpu.memory_space<vmem>>, %arg6: memref<1x1x3x1x128xf32, #tpu.memory_space<vmem>>, %arg7: memref<1x1x3x1x128xf32, #tpu.memory_space<vmem>>, %arg8: memref<1x1x8x128xf32, #tpu.memory_space<vmem>>) attributes {dimension_semantics = [#tpu.dimension_semantics<parallel>, #tpu.dimension_semantics<parallel>], iteration_bounds = array<i64: 2, 2>, scalar_prefetch = 0 : i64, scratch_operands = 0 : i64, tpu.core_type = #tpu.core_type<tc>, window_params = [{transform_indices = @transform_0, window_bounds = array<i64: 1, 3, 8, 128>}, {transform_indices = @transform_1, window_bounds = array<i64: 1, 3, 8, 128>}, {transform_indices = @transform_2, window_bounds = array<i64: 1, 1, 3, 1, 128>}, {transform_indices = @transform_3, window_bounds = array<i64: 1, 1, 3, 1, 128>}, {transform_indices = @transform_4, window_bounds = array<i64: 1, 1, 3, 1, 128>}, {transform_indices = @transform_5, window_bounds = array<i64: 1, 1, 3, 1, 128>}, {transform_indices = @transform_6, window_bounds = array<i64: 1, 1, 8, 128>}]} {
    %0 = tpu.iota {dimensions = array<i32: 1>} : vector<1x8x1xi32>
    %1 = tpu.iota {dimensions = array<i32: 2>} : vector<1x1x128xi32>
    %c0_i32 = arith.constant 0 : i32
    %2 = vector.broadcast %c0_i32 : i32 to vector<1x8x1xi32>
    %3 = arith.cmpi eq, %0, %2 : vector<1x8x1xi32>
    %c7_i32 = arith.constant 7 : i32
    %4 = vector.broadcast %c7_i32 : i32 to vector<1x8x1xi32>
    %5 = arith.cmpi eq, %0, %4 : vector<1x8x1xi32>
    %c0_i32_0 = arith.constant 0 : i32
    %6 = vector.broadcast %c0_i32_0 : i32 to vector<1x1x128xi32>
    %7 = arith.cmpi eq, %1, %6 : vector<1x1x128xi32>
    %c127_i32 = arith.constant 127 : i32
    %8 = vector.broadcast %c127_i32 : i32 to vector<1x1x128xi32>
    %9 = arith.cmpi eq, %1, %8 : vector<1x1x128xi32>
    %c0 = arith.constant 0 : index
    %c0_1 = arith.constant 0 : index
    %c0_2 = arith.constant 0 : index
    %c0_3 = arith.constant 0 : index
    %10 = vector.load %arg2[%c0, %c0_1, %c0_2, %c0_3] : memref<1x3x8x128xf32, #tpu.memory_space<vmem>>, vector<1x3x8x128xf32>
    %11 = vector.shape_cast %10 : vector<1x3x8x128xf32> to vector<3x8x128xf32>
    %c0_4 = arith.constant 0 : index
    %c0_5 = arith.constant 0 : index
    %c0_6 = arith.constant 0 : index
    %c0_7 = arith.constant 0 : index
    %c0_8 = arith.constant 0 : index
    %12 = vector.load %arg4[%c0_4, %c0_5, %c0_6, %c0_7, %c0_8] : memref<1x1x3x1x128xf32, #tpu.memory_space<vmem>>, vector<1x1x3x1x128xf32>
    %13 = vector.shape_cast %12 : vector<1x1x3x1x128xf32> to vector<3x1x128xf32>
    %c0_9 = arith.constant 0 : index
    %c0_10 = arith.constant 0 : index
    %c0_11 = arith.constant 0 : index
    %c0_12 = arith.constant 0 : index
    %c0_13 = arith.constant 0 : index
    %14 = vector.load %arg5[%c0_9, %c0_10, %c0_11, %c0_12, %c0_13] : memref<1x1x3x1x128xf32, #tpu.memory_space<vmem>>, vector<1x1x3x1x128xf32>
    %15 = vector.shape_cast %14 : vector<1x1x3x1x128xf32> to vector<3x1x128xf32>
    %c1_i32 = arith.constant 1 : i32
    %16 = tpu.dynamic_rotate %11 by %c1_i32 dim 1 : vector<3x8x128xf32>, i32 -> vector<3x8x128xf32>
    %17 = vector.shape_cast %3 : vector<1x8x1xi1> to vector<1x8x1xi1>
    %18 = vector.broadcast %17 : vector<1x8x1xi1> to vector<3x8x128xi1>
    %19 = vector.shape_cast %13 : vector<3x1x128xf32> to vector<3x1x128xf32>
    %20 = vector.broadcast %19 : vector<3x1x128xf32> to vector<3x8x128xf32>
    %21 = arith.select %18, %20, %16 : vector<3x8x128xi1>, vector<3x8x128xf32>
    %c7_i32_14 = arith.constant 7 : i32
    %22 = tpu.dynamic_rotate %11 by %c7_i32_14 dim 1 : vector<3x8x128xf32>, i32 -> vector<3x8x128xf32>
    %23 = vector.shape_cast %5 : vector<1x8x1xi1> to vector<1x8x1xi1>
    %24 = vector.broadcast %23 : vector<1x8x1xi1> to vector<3x8x128xi1>
    %25 = vector.shape_cast %15 : vector<3x1x128xf32> to vector<3x1x128xf32>
    %26 = vector.broadcast %25 : vector<3x1x128xf32> to vector<3x8x128xf32>
    %27 = arith.select %24, %26, %22 : vector<3x8x128xi1>, vector<3x8x128xf32>
    %cst = arith.constant 2.000000e+00 : f32
    %28 = vector.broadcast %cst : f32 to vector<3x8x128xf32>
    %29 = arith.mulf %28, %11 : vector<3x8x128xf32>
    %30 = arith.addf %21, %29 : vector<3x8x128xf32>
    %31 = arith.addf %30, %27 : vector<3x8x128xf32>
    %32 = arith.subf %27, %21 : vector<3x8x128xf32>
    %c1_i32_15 = arith.constant 1 : i32
    %33 = tpu.dynamic_rotate %31 by %c1_i32_15 dim 2 : vector<3x8x128xf32>, i32 -> vector<3x8x128xf32>
    %cst_16 = arith.constant 0.000000e+00 : f32
    %34 = vector.shape_cast %7 : vector<1x1x128xi1> to vector<1x1x128xi1>
    %35 = vector.broadcast %34 : vector<1x1x128xi1> to vector<3x8x128xi1>
    %36 = vector.broadcast %cst_16 : f32 to vector<3x8x128xf32>
    %37 = arith.select %35, %36, %33 : vector<3x8x128xi1>, vector<3x8x128xf32>
    %c127_i32_17 = arith.constant 127 : i32
    %38 = tpu.dynamic_rotate %31 by %c127_i32_17 dim 2 : vector<3x8x128xf32>, i32 -> vector<3x8x128xf32>
    %cst_18 = arith.constant 0.000000e+00 : f32
    %39 = vector.shape_cast %9 : vector<1x1x128xi1> to vector<1x1x128xi1>
    %40 = vector.broadcast %39 : vector<1x1x128xi1> to vector<3x8x128xi1>
    %41 = vector.broadcast %cst_18 : f32 to vector<3x8x128xf32>
    %42 = arith.select %40, %41, %38 : vector<3x8x128xi1>, vector<3x8x128xf32>
    %c1_i32_19 = arith.constant 1 : i32
    %43 = tpu.dynamic_rotate %32 by %c1_i32_19 dim 2 : vector<3x8x128xf32>, i32 -> vector<3x8x128xf32>
    %cst_20 = arith.constant 0.000000e+00 : f32
    %44 = vector.shape_cast %7 : vector<1x1x128xi1> to vector<1x1x128xi1>
    %45 = vector.broadcast %44 : vector<1x1x128xi1> to vector<3x8x128xi1>
    %46 = vector.broadcast %cst_20 : f32 to vector<3x8x128xf32>
    %47 = arith.select %45, %46, %43 : vector<3x8x128xi1>, vector<3x8x128xf32>
    %c127_i32_21 = arith.constant 127 : i32
    %48 = tpu.dynamic_rotate %32 by %c127_i32_21 dim 2 : vector<3x8x128xf32>, i32 -> vector<3x8x128xf32>
    %cst_22 = arith.constant 0.000000e+00 : f32
    %49 = vector.shape_cast %9 : vector<1x1x128xi1> to vector<1x1x128xi1>
    %50 = vector.broadcast %49 : vector<1x1x128xi1> to vector<3x8x128xi1>
    %51 = vector.broadcast %cst_22 : f32 to vector<3x8x128xf32>
    %52 = arith.select %50, %51, %48 : vector<3x8x128xi1>, vector<3x8x128xf32>
    %53 = arith.subf %42, %37 : vector<3x8x128xf32>
    %cst_23 = arith.constant 2.000000e+00 : f32
    %54 = vector.broadcast %cst_23 : f32 to vector<3x8x128xf32>
    %55 = arith.mulf %54, %32 : vector<3x8x128xf32>
    %56 = arith.addf %47, %55 : vector<3x8x128xf32>
    %57 = arith.addf %56, %52 : vector<3x8x128xf32>
    %58 = arith.mulf %53, %53 : vector<3x8x128xf32>
    %59 = arith.mulf %57, %57 : vector<3x8x128xf32>
    %60 = arith.addf %58, %59 : vector<3x8x128xf32>
    %cst_24 = arith.constant 9.99999997E-7 : f32
    %61 = vector.broadcast %cst_24 : f32 to vector<3x8x128xf32>
    %62 = arith.addf %60, %61 : vector<3x8x128xf32>
    %63 = math.sqrt %62 : vector<3x8x128xf32>
    %c0_25 = arith.constant 0 : index
    %c0_26 = arith.constant 0 : index
    %c0_27 = arith.constant 0 : index
    %c0_28 = arith.constant 0 : index
    %64 = vector.load %arg3[%c0_25, %c0_26, %c0_27, %c0_28] : memref<1x3x8x128xf32, #tpu.memory_space<vmem>>, vector<1x3x8x128xf32>
    %65 = vector.shape_cast %64 : vector<1x3x8x128xf32> to vector<3x8x128xf32>
    %c0_29 = arith.constant 0 : index
    %c0_30 = arith.constant 0 : index
    %c0_31 = arith.constant 0 : index
    %c0_32 = arith.constant 0 : index
    %c0_33 = arith.constant 0 : index
    %66 = vector.load %arg6[%c0_29, %c0_30, %c0_31, %c0_32, %c0_33] : memref<1x1x3x1x128xf32, #tpu.memory_space<vmem>>, vector<1x1x3x1x128xf32>
    %67 = vector.shape_cast %66 : vector<1x1x3x1x128xf32> to vector<3x1x128xf32>
    %c0_34 = arith.constant 0 : index
    %c0_35 = arith.constant 0 : index
    %c0_36 = arith.constant 0 : index
    %c0_37 = arith.constant 0 : index
    %c0_38 = arith.constant 0 : index
    %68 = vector.load %arg7[%c0_34, %c0_35, %c0_36, %c0_37, %c0_38] : memref<1x1x3x1x128xf32, #tpu.memory_space<vmem>>, vector<1x1x3x1x128xf32>
    %69 = vector.shape_cast %68 : vector<1x1x3x1x128xf32> to vector<3x1x128xf32>
    %c1_i32_39 = arith.constant 1 : i32
    %70 = tpu.dynamic_rotate %65 by %c1_i32_39 dim 1 : vector<3x8x128xf32>, i32 -> vector<3x8x128xf32>
    %71 = vector.shape_cast %3 : vector<1x8x1xi1> to vector<1x8x1xi1>
    %72 = vector.broadcast %71 : vector<1x8x1xi1> to vector<3x8x128xi1>
    %73 = vector.shape_cast %67 : vector<3x1x128xf32> to vector<3x1x128xf32>
    %74 = vector.broadcast %73 : vector<3x1x128xf32> to vector<3x8x128xf32>
    %75 = arith.select %72, %74, %70 : vector<3x8x128xi1>, vector<3x8x128xf32>
    %c7_i32_40 = arith.constant 7 : i32
    %76 = tpu.dynamic_rotate %65 by %c7_i32_40 dim 1 : vector<3x8x128xf32>, i32 -> vector<3x8x128xf32>
    %77 = vector.shape_cast %5 : vector<1x8x1xi1> to vector<1x8x1xi1>
    %78 = vector.broadcast %77 : vector<1x8x1xi1> to vector<3x8x128xi1>
    %79 = vector.shape_cast %69 : vector<3x1x128xf32> to vector<3x1x128xf32>
    %80 = vector.broadcast %79 : vector<3x1x128xf32> to vector<3x8x128xf32>
    %81 = arith.select %78, %80, %76 : vector<3x8x128xi1>, vector<3x8x128xf32>
    %cst_41 = arith.constant 2.000000e+00 : f32
    %82 = vector.broadcast %cst_41 : f32 to vector<3x8x128xf32>
    %83 = arith.mulf %82, %65 : vector<3x8x128xf32>
    %84 = arith.addf %75, %83 : vector<3x8x128xf32>
    %85 = arith.addf %84, %81 : vector<3x8x128xf32>
    %86 = arith.subf %81, %75 : vector<3x8x128xf32>
    %c1_i32_42 = arith.constant 1 : i32
    %87 = tpu.dynamic_rotate %85 by %c1_i32_42 dim 2 : vector<3x8x128xf32>, i32 -> vector<3x8x128xf32>
    %cst_43 = arith.constant 0.000000e+00 : f32
    %88 = vector.shape_cast %7 : vector<1x1x128xi1> to vector<1x1x128xi1>
    %89 = vector.broadcast %88 : vector<1x1x128xi1> to vector<3x8x128xi1>
    %90 = vector.broadcast %cst_43 : f32 to vector<3x8x128xf32>
    %91 = arith.select %89, %90, %87 : vector<3x8x128xi1>, vector<3x8x128xf32>
    %c127_i32_44 = arith.constant 127 : i32
    %92 = tpu.dynamic_rotate %85 by %c127_i32_44 dim 2 : vector<3x8x128xf32>, i32 -> vector<3x8x128xf32>
    %cst_45 = arith.constant 0.000000e+00 : f32
    %93 = vector.shape_cast %9 : vector<1x1x128xi1> to vector<1x1x128xi1>
    %94 = vector.broadcast %93 : vector<1x1x128xi1> to vector<3x8x128xi1>
    %95 = vector.broadcast %cst_45 : f32 to vector<3x8x128xf32>
    %96 = arith.select %94, %95, %92 : vector<3x8x128xi1>, vector<3x8x128xf32>
    %c1_i32_46 = arith.constant 1 : i32
    %97 = tpu.dynamic_rotate %86 by %c1_i32_46 dim 2 : vector<3x8x128xf32>, i32 -> vector<3x8x128xf32>
    %cst_47 = arith.constant 0.000000e+00 : f32
    %98 = vector.shape_cast %7 : vector<1x1x128xi1> to vector<1x1x128xi1>
    %99 = vector.broadcast %98 : vector<1x1x128xi1> to vector<3x8x128xi1>
    %100 = vector.broadcast %cst_47 : f32 to vector<3x8x128xf32>
    %101 = arith.select %99, %100, %97 : vector<3x8x128xi1>, vector<3x8x128xf32>
    %c127_i32_48 = arith.constant 127 : i32
    %102 = tpu.dynamic_rotate %86 by %c127_i32_48 dim 2 : vector<3x8x128xf32>, i32 -> vector<3x8x128xf32>
    %cst_49 = arith.constant 0.000000e+00 : f32
    %103 = vector.shape_cast %9 : vector<1x1x128xi1> to vector<1x1x128xi1>
    %104 = vector.broadcast %103 : vector<1x1x128xi1> to vector<3x8x128xi1>
    %105 = vector.broadcast %cst_49 : f32 to vector<3x8x128xf32>
    %106 = arith.select %104, %105, %102 : vector<3x8x128xi1>, vector<3x8x128xf32>
    %107 = arith.subf %96, %91 : vector<3x8x128xf32>
    %cst_50 = arith.constant 2.000000e+00 : f32
    %108 = vector.broadcast %cst_50 : f32 to vector<3x8x128xf32>
    %109 = arith.mulf %108, %86 : vector<3x8x128xf32>
    %110 = arith.addf %101, %109 : vector<3x8x128xf32>
    %111 = arith.addf %110, %106 : vector<3x8x128xf32>
    %112 = arith.mulf %107, %107 : vector<3x8x128xf32>
    %113 = arith.mulf %111, %111 : vector<3x8x128xf32>
    %114 = arith.addf %112, %113 : vector<3x8x128xf32>
    %cst_51 = arith.constant 9.99999997E-7 : f32
    %115 = vector.broadcast %cst_51 : f32 to vector<3x8x128xf32>
    %116 = arith.addf %114, %115 : vector<3x8x128xf32>
    %117 = math.sqrt %116 : vector<3x8x128xf32>
    %118 = arith.subf %63, %117 : vector<3x8x128xf32>
    %119 = math.absf %118 : vector<3x8x128xf32>
    %120 = vector.shape_cast %119 : vector<3x8x128xf32> to vector<1x3x8x128xf32>
    %cst_52 = arith.constant dense<0.000000e+00> : vector<1xf32>
    %121 = vector.multi_reduction <add>, %120, %cst_52 [1, 2, 3] : vector<1x3x8x128xf32> to vector<1xf32>
    %122 = vector.shape_cast %121 : vector<1xf32> to vector<1x1x1x1xf32>
    %123 = vector.extract %122[0, 0, 0, 0] : f32 from vector<1x1x1x1xf32>
    %124 = vector.broadcast %123 : f32 to vector<1x1x8x128xf32>
    %c0_53 = arith.constant 0 : index
    %c0_54 = arith.constant 0 : index
    %c0_55 = arith.constant 0 : index
    %c0_56 = arith.constant 0 : index
    %125 = vector.load %arg8[%c0_53, %c0_54, %c0_55, %c0_56] : memref<1x1x8x128xf32, #tpu.memory_space<vmem>>, vector<1x1x8x128xf32>
    tpu.vector_store %arg8[%c0_53, %c0_54, %c0_55, %c0_56], %124 {strides = array<i32>} : memref<1x1x8x128xf32, #tpu.memory_space<vmem>>, vector<1x1x8x128xf32>,
    return
  }
  func.func @transform_0(%arg0: i32, %arg1: i32) -> (i32, i32, i32, i32) {
    %c0_i32 = arith.constant 0 : i32
    %c0_i32_0 = arith.constant 0 : i32
    %c0_i32_1 = arith.constant 0 : i32
    return %arg0, %c0_i32, %arg1, %c0_i32_0 : i32, i32, i32, i32
  }
  func.func @transform_1(%arg0: i32, %arg1: i32) -> (i32, i32, i32, i32) {
    %c0_i32 = arith.constant 0 : i32
    %c0_i32_0 = arith.constant 0 : i32
    %c0_i32_1 = arith.constant 0 : i32
    return %arg0, %c0_i32, %arg1, %c0_i32_0 : i32, i32, i32, i32
  }
  func.func @transform_2(%arg0: i32, %arg1: i32) -> (i32, i32, i32, i32, i32) {
    %c0_i32 = arith.constant 0 : i32
    %c0_i32_0 = arith.constant 0 : i32
    %c0_i32_1 = arith.constant 0 : i32
    %c0_i32_2 = arith.constant 0 : i32
    return %arg0, %arg1, %c0_i32, %c0_i32_0, %c0_i32_1 : i32, i32, i32, i32, i32
  }
  func.func @transform_3(%arg0: i32, %arg1: i32) -> (i32, i32, i32, i32, i32) {
    %c0_i32 = arith.constant 0 : i32
    %c0_i32_0 = arith.constant 0 : i32
    %c0_i32_1 = arith.constant 0 : i32
    %c0_i32_2 = arith.constant 0 : i32
    return %arg0, %arg1, %c0_i32, %c0_i32_0, %c0_i32_1 : i32, i32, i32, i32, i32
  }
  func.func @transform_4(%arg0: i32, %arg1: i32) -> (i32, i32, i32, i32, i32) {
    %c0_i32 = arith.constant 0 : i32
    %c0_i32_0 = arith.constant 0 : i32
    %c0_i32_1 = arith.constant 0 : i32
    %c0_i32_2 = arith.constant 0 : i32
    return %arg0, %arg1, %c0_i32, %c0_i32_0, %c0_i32_1 : i32, i32, i32, i32, i32
  }
  func.func @transform_5(%arg0: i32, %arg1: i32) -> (i32, i32, i32, i32, i32) {
    %c0_i32 = arith.constant 0 : i32
    %c0_i32_0 = arith.constant 0 : i32
    %c0_i32_1 = arith.constant 0 : i32
    %c0_i32_2 = arith.constant 0 : i32
    return %arg0, %arg1, %c0_i32, %c0_i32_0, %c0_i32_1 : i32, i32, i32, i32, i32
  }
  func.func @transform_6(%arg0: i32, %arg1: i32) -> (i32, i32, i32, i32) {
    %c0_i32 = arith.constant 0 : i32
    %c0_i32_0 = arith.constant 0 : i32
    %c0_i32_1 = arith.constant 0 : i32
    return %arg0, %arg1, %c0_i32, %c0_i32_0 : i32, i32, i32, i32
  }
}

</mosaic_0001>

<bundles_post_ra>
// kernel: tpu_custom_call.1
= control target key start
LH: loop header
LB: loop body
LE: loop exit
PB: predicated region body
PF: predicated region fallthrough
CT: control target
= control target key end

     0   :  { %s2038_s0 = inlined_call_operand.hbm [shape: f32[2,3,16,128], index: 0, kind: input, shape index: {}]   ;;  %s2039_s1 = inlined_call_operand.hbm [shape: f32[2,3,16,128], index: 1, kind: input, shape index: {}]   ;;  %s2040_s2 = inlined_call_operand.hbm [shape: f32[2,2,3,1,128], index: 2, kind: input, shape index: {}]   ;;  %s2041_s3 = inlined_call_operand.hbm [shape: f32[2,2,3,1,128], index: 3, kind: input, shape index: {}]   ;;  %s2042_s4 = inlined_call_operand.hbm [shape: f32[2,2,3,1,128], index: 4, kind: input, shape index: {}]   ;;  %s2043_s5 = inlined_call_operand.hbm [shape: f32[2,2,3,1,128], index: 5, kind: input, shape index: {}]   ;;  %s2044_s6 = inlined_call_operand.hbm [shape: f32[2,2,8,128], index: 6, kind: output, shape index: {}]  }
   0x1   :  { %2065 = sst [smem:[#allocation32_spill]] %s2039_s1 }
   0x2   :  { %2066 = sst [smem:[#allocation33_spill]] %s2041_s3 }
   0x3   :  { %2067 = sst [smem:[#allocation34_spill]] %s2044_s6 }
   0x4   :  { %11 = vsyncpa [#allocation3], 0 }
   0x5   :  { %13 = vsyncpa [#allocation3 + $0x1], 0 }
   0x6   :  { %14 = vsyncpa [#allocation6], 0 }
   0x7   :  { %16 = vsyncpa [#allocation6 + $0x1], 0 }
   0x8   :  { %17 = vsyncpa [#allocation9], 0 }
   0x9   :  { %19 = vsyncpa [#allocation9 + $0x1], 0 }
   0xa   :  { %20 = vsyncpa [#allocation12], 0 }
   0xb   :  { %22 = vsyncpa [#allocation12 + $0x1], 0 }
   0xc   :  { %23 = vsyncpa [#allocation4], 0 }
   0xd   :  { %25 = vsyncpa [#allocation4 + $0x1], 0  ;;  %s1557_s21 = smov 0   ;;  %s1559_s22 = smov 0  }
   0xe   :  { %s1561_s23 = smov 0   ;;  %s1563_s24 = smov 0  }
   0xf   :  { %s1565_s25 = smov 0   ;;  %s1567_s26 = smov 0  }
  0x10   :  { %s1569_s27 = smov 0   ;;  %s1571_s28 = smov 0  }
  0x11 LB: > { %2068 = sst [smem:[#allocation19_spill]] %s1478_s21  ;;  %s1598_s29 = sadd.s32 4294967295, %s1506_s28   ;;  %s1506_s28 = sphi %s1571_s28, %s31_s28   ;;  %s1502_s27 = sphi %s1569_s27, %s2111_s27   ;;  %s1498_s26 = sphi %s1567_s26, %s2110_s26   ;;  %s1494_s25 = sphi %s1565_s25, %s2109_s25   ;;  %s1490_s24 = sphi %s1563_s24, %s2108_s24   ;;  %s1486_s23 = sphi %s1561_s23, %s2107_s23   ;;  %s1482_s22 = sphi %s1559_s22, %s2113_s22   ;;  %s1478_s21 = sphi %s1557_s21, %s2112_s21  }
  0x12   : > { %2069 = sst [smem:[#allocation20_spill]] %s1486_s23  ;;  %s1060_s30 = sadd.s32 4294967294, %s1506_s28  }
  0x13   : > { %2070 = sst [smem:[#allocation21_spill]] %s1490_s24  ;;  %s40_s7 = sadd.s32 1, %s1498_s26 }
  0x14   : > { %2071 = sst [smem:[#allocation22_spill]] %s1494_s25  ;;  %s43_s8 = sadd.s32 1, %s1502_s27 }
  0x15   : > { %2072 = sst [smem:[#allocation23_spill]] %s1498_s26  ;;  %p41_p0 = scmp.ge.s32.totalorder %s40_s7, 2 }
  0x16   : > { %2073 = sst [smem:[#allocation24_spill]] %s1502_s27  ;;  %s52_s9 = sadd.s32 1, %s1486_s23 }
  0x17   : > { %2074 = sst [smem:[#allocation25_spill]] %s1506_s28  ;;  %p59_p1 = scmp.ne.s32.totalorder %s1486_s23, %s1482_s22 }
  0x18   : > { %2075 = sst [smem:[#allocation26_spill]] %s1598_s29  ;;  %p60_p2 = scmp.eq.s32.totalorder %s1506_s28, 0 }
  0x19   : > { %s2115_s7 = smov (%p41_p0, %s40_s7), 0  ;;  %s2117_s8 = smov (!%p41_p0, %s43_s8), %s1502_s27 }
  0x1a   : > { %2076 = sst [smem:[#allocation27_spill]] %s2115_s7  ;;  %s48_s10 = ssub.s32 %s1498_s26, %s2115_s7 }
  0x1b   : > { %p1612_p3 = por %p60_p2, %p59_p1  ;;  %p45_p4 = scmp.ge.s32.totalorder %s2117_s8, 2 }
  0x1c   : > { %p65_p5 = scmp.ne.s32.totalorder %s1482_s22, %s1478_s21  ;;  %p66_p6 = scmp.eq.s32.totalorder %s1598_s29, 0 }
  0x1d   : > { %p231_p7 = scmp.eq.s32.totalorder %s1598_s29, 3  ;;  %s2119_s8 = smov (%p45_p4, %s2117_s8), 0 }
  0x1e   : > { %2078 = sst [smem:[#allocation28_spill]] %s2119_s8  ;;  %p1622_p8 = por %p66_p6, %p65_p5 }
  0x1f   : > { %p1626_p9 = por %p231_p7, %p59_p1  ;;  %s47_s14 = ssub.s32 %s1502_s27, %s2119_s8 }
  0x20   : > { %p237_p10 = scmp.eq.s32.totalorder %s1060_s30, 3  ;;  %s49_s15 = sor.u32 %s48_s10, %s47_s14 }
  0x21   : > { %s2080_s13 = scalar_select %p1626_p9, 1, 0 }
  0x22   : > { %p50_p11 = scmp.eq.s32.totalorder %s49_s15, 0  ;;  %p1632_p12 = por %p237_p10, %p65_p5 }
  0x23   : > { %2081 = sst [smem:[#allocation29_spill]] %s2080_s13  ;;  %p1145_p13 = scmp.lt.s32.totalorder %s1506_s28, 4 }
  0x24   : > { %s2082_s16 = scalar_select %p1632_p12, 1, 0 }
  0x25   : > { %s1638_s17 = sand.u32 1, %s1486_s23   ;;  %p1646_p0 = pnand %p1145_p13, %p1612_p3 }
  0x26   : > { %2083 = sst [smem:[#allocation30_spill]] %s2082_s16  ;;  %s2050_s19 = smul.u32 24, %s1638_s17 }
  0x27   : > { %s1641_s18 = scalar_select %p50_p11, %s1486_s23, %s52_s9  }
  0x28   : > { %s2048_s30 = smul.u32 6, %s1502_s27  ;;  %s2052_s15 = sand.u32 1, %s1506_s28  }
  0x29   : > { %2084 = sst [smem:[#allocation31_spill]] %s1641_s18  ;;  %s283_s11 = scalar_lea.vmem [#allocation5], %s2050_s19 }
  0x2a   : > { %s1654_s10 = sadd.s32 %s1498_s26, %s2048_s30  ;;  %s2086_s1 = sld [smem:[#allocation32_spill]] }
  0x2b   : > { %s2051_s14 = sshll.u32 %s1654_s10, 7  ;;  %s291_s18 = sshll.u32 %s283_s11, 4  ;;  %s292_s18 = int_to_ptr.vmem [resolvable:$true] %s291_s18 }
  0x2c   : > { %p1069_p1 = scmp.ge.s32.totalorder %s1506_s28, 1  ;;  %s1668_s23 = scalar_lea.sflag [#allocation6], %s2052_s15 }
  0x2d   : > { %p1672_p2 = pneg %p1646_p0  ;;  %s1243_s16 = scalar_lea.vmem %s292_s18, 384 }
  0x2e   : > { %p1244_p3 = scmp.ne.s32.totalorder %s292_s18, %s1243_s16  ;;  %s1508_s7 = smov [#allocation5]  }
  0x2f   : > { %s1248_s8 = sshll.u32 %s1508_s7, 4  ;;  %s1249_s8 = int_to_ptr.vmem [resolvable:$false] %s1248_s8 }
  0x30   : > { %s290_s9 = scalar_lea.hbm %s2086_s1, %s2051_s14  ;;  %p1246_p4 = pnand %p1244_p3, %p1672_p2 }
  0x31   : > { %s1250_s11 = scalar_lea.vmem %s1249_s8, 768  ;;  %p1251_p6 = scmp.lt.s32.totalorder %s292_s18, %s1249_s8 }
  0x32   : > { %p1247_p5 = pneg %p1246_p4  ;;  %p1252_p7 = scmp.lt.s32.totalorder %s1250_s11, %s1243_s16 }
  0x34   : > { %p1253_p10 = por %p1252_p7, %p1251_p6 }
  0x36   : > { %p1254_p11 = pnand %p1253_p10, %p1247_p5 }
  0x38   : > { %1257 = shalt.err (!%p1254_p11)
}
  0x39   : > { %s2057_s19 = smov 256   ;;  %s2058_s14 = smov 128  }
  0x3a   : > { %s2059_s15 = smov 8   ;;  %p391_p13 = scmp.lt.s32.totalorder %s1506_s28, 5 }
  0x3b   : > { %1128 = dma.hbm_to_vmem [thread:$0]  (!%p1646_p0), %s290_s9, 384, %s292_s18, %s1668_s23, %s2057_s19, %s2058_s14, %s2059_s15  }
  0x3c   : > { %s1686_s16 = smul.u32 3, %s1638_s17  ;;  %p1691_p3 = pnand %p1069_p1, %p391_p13 }
  0x3d   : > { %s1093_s7 = smul.u32 3, %s1498_s26  ;;  %s2090_s3 = sld [smem:[#allocation33_spill]] }
  0x3e   : > { %s2089_s11 = smul.u32 6, %s1502_s27  ;;  %s328_s18 = scalar_lea.vmem [#allocation8], %s1686_s16 }
  0x3f   : > { %s337_s9 = sshll.u32 %s328_s18, 4  ;;  %s2091_s19 = sand.u32 1, %s1506_s28   ;;  %s338_s9 = int_to_ptr.vmem [resolvable:$true] %s337_s9 }
  0x40   : > { %s311_s1 = sadd.s32 %s1093_s7, %s2089_s11  ;;  %s1706_s14 = scalar_lea.sflag [#allocation9], %s2091_s19 }
  0x41   : > { %s1697_s21 = sshll.u32 %s311_s1, 4  ;;  %s1271_s15 = scalar_lea.vmem %s338_s9, 48 }
  0x42   : > { %p1272_p1 = scmp.ne.s32.totalorder %s338_s9, %s1271_s15  ;;  %s1512_s27 = smov [#allocation8]  }
  0x43   : > { %s336_s24 = scalar_lea.hbm %s2090_s3, %s1697_s21  ;;  %s1276_s7 = sshll.u32 %s1512_s27, 4  ;;  %s1277_s7 = int_to_ptr.vmem [resolvable:$false] %s1276_s7 }
  0x44   : > { %p1274_p4 = pnand %p1272_p1, %p1672_p2  ;;  %s1278_s1 = scalar_lea.vmem %s1277_s7, 96 }
  0x45   : > { %p1279_p6 = scmp.lt.s32.totalorder %s338_s9, %s1277_s7  ;;  %p1280_p7 = scmp.lt.s32.totalorder %s1278_s1, %s1271_s15 }
  0x46   : > { %p1275_p5 = pneg %p1274_p4 }
  0x47   : > { %p1281_p10 = por %p1280_p7, %p1279_p6 }
  0x49   : > { %p1282_p11 = pnand %p1281_p10, %p1275_p5 }
  0x4b   : > { %1285 = shalt.err (!%p1282_p11)
}
  0x4c   : > { %s1513_s6 = smov 16   ;;  %s1514_s13 = smov 1  }
  0x4d   : > { %1134 = dma.hbm_to_vmem [thread:$0]  (!%p1646_p0), %s336_s24, 48, %s338_s9, %s1706_s14, %s1513_s6, %s1513_s6, %s1514_s13  }
  0x4e   : > { %s2092_s27 = sshll.u32 %s1654_s10, 7  ;;  %s2093_s18 = smul.u32 24, %s1638_s17 }
  0x4f   : > { %s268_s11 = scalar_lea.hbm %s2038_s0, %s2092_s27  ;;  %s258_s25 = scalar_lea.sflag [#allocation3], %s1638_s17 }
  0x50   : > { %s261_s7 = scalar_lea.vmem [#allocation2], %s2093_s18  ;;  %s1515_s24 = smov [#allocation2]  }
  0x51   : > { %s269_s1 = sshll.u32 %s261_s7, 4  ;;  %s1304_s10 = sshll.u32 %s1515_s24, 4  ;;  %s270_s1 = int_to_ptr.vmem [resolvable:$true] %s269_s1  ;;  %s1305_s10 = int_to_ptr.vmem [resolvable:$false] %s1304_s10 }
  0x52   : > { %s1299_s29 = scalar_lea.vmem %s270_s1, 384  ;;  %s1306_s9 = scalar_lea.vmem %s1305_s10, 768 }
  0x53   : > { %p1300_p13 = scmp.ne.s32.totalorder %s270_s1, %s1299_s29  ;;  %p1307_p5 = scmp.lt.s32.totalorder %s270_s1, %s1305_s10 }
  0x54   : > { %p1308_p6 = scmp.lt.s32.totalorder %s1306_s9, %s1299_s29 }
  0x55   : > { %p1302_p1 = pnand %p1300_p13, %p1672_p2 }
  0x56   : > { %p1309_p7 = por %p1308_p6, %p1307_p5 }
  0x57   : > { %p1303_p4 = pneg %p1302_p1 }
  0x59   : > { %p1310_p10 = pnand %p1309_p7, %p1303_p4 }
  0x5b   : > { %1313 = shalt.err (!%p1310_p10)
}
  0x5c   : > { %s2094_s27 = smov 8   ;;  %s2095_s3 = smov 128  }
  0x5d   : > { %s2096_s26 = smov 256   ;;  %s305_s19 = scalar_lea.vmem [#allocation7], %s1686_s16 }
  0x5e   : > { %1125 = dma.hbm_to_vmem [thread:$0]  (!%p1646_p0), %s268_s11, 384, %s270_s1, %s258_s25, %s2096_s26, %s2095_s3, %s2094_s27  }
  0x5f   : > { %s314_s15 = sshll.u32 %s305_s19, 4  ;;  %s359_s24 = scalar_lea.hbm %s2042_s4, %s1697_s21  ;;  %s315_s15 = int_to_ptr.vmem [resolvable:$true] %s314_s15 }
  0x60   : > { %s1327_s29 = scalar_lea.vmem %s315_s15, 48  ;;  %s1516_s10 = smov [#allocation7]  }
  0x61   : > { %p1328_p11 = scmp.ne.s32.totalorder %s315_s15, %s1327_s29  ;;  %s1332_s9 = sshll.u32 %s1516_s10, 4  ;;  %s1333_s9 = int_to_ptr.vmem [resolvable:$false] %s1332_s9 }
  0x62   : > { %s1334_s28 = scalar_lea.vmem %s1333_s9, 96  ;;  %p1335_p4 = scmp.lt.s32.totalorder %s315_s15, %s1333_s9 }
  0x63   : > { %p1330_p13 = pnand %p1328_p11, %p1672_p2  ;;  %p1336_p5 = scmp.lt.s32.totalorder %s1334_s28, %s1327_s29 }
  0x65   : > { %p1331_p1 = pneg %p1330_p13  ;;  %p1337_p6 = por %p1336_p5, %p1335_p4 }
  0x67   : > { %p1338_p7 = pnand %p1337_p6, %p1331_p1 }
  0x69   : > { %1341 = shalt.err (!%p1338_p7)
}
  0x6a   : > { %s2097_s1 = scalar_lea.hbm %s2040_s2, %s1697_s21  ;;  %s351_s27 = scalar_lea.vmem [#allocation10], %s1686_s16 }
  0x6b   : > { %1131 = dma.hbm_to_vmem [thread:$0]  (!%p1646_p0), %s2097_s1, 48, %s315_s15, %s1668_s23, %s1513_s6, %s1513_s6, %s1514_s13  }
  0x6c   : > { %s360_s3 = sshll.u32 %s351_s27, 4  ;;  %s1517_s26 = smov [#allocation10]   ;;  %s361_s3 = int_to_ptr.vmem [resolvable:$true] %s360_s3 }
  0x6d   : > { %s1355_s28 = scalar_lea.vmem %s361_s3, 48  ;;  %s1360_s19 = sshll.u32 %s1517_s26, 4  ;;  %s1361_s19 = int_to_ptr.vmem [resolvable:$false] %s1360_s19 }
  0x6e   : > { %p1356_p10 = scmp.ne.s32.totalorder %s361_s3, %s1355_s28  ;;  %s1362_s18 = scalar_lea.vmem %s1361_s19, 96 }
  0x6f   : > { %p1363_p1 = scmp.lt.s32.totalorder %s361_s3, %s1361_s19  ;;  %p1364_p4 = scmp.lt.s32.totalorder %s1362_s18, %s1355_s28 }
  0x70   : > { %p1358_p11 = pnand %p1356_p10, %p1672_p2 }
  0x71   : > { %p1365_p5 = por %p1364_p4, %p1363_p1 }
  0x72   : > { %p1359_p13 = pneg %p1358_p11 }
  0x74   : > { %p1366_p6 = pnand %p1365_p5, %p1359_p13 }
  0x76   : > { %1369 = shalt.err (!%p1366_p6)
}
  0x77   : > { %1137 = dma.hbm_to_vmem [thread:$0]  (!%p1646_p0), %s359_s24, 48, %s361_s3, %s1706_s14, %s1513_s6, %s1513_s6, %s1514_s13  }
  0x78   : > { %s382_s10 = scalar_lea.hbm %s2043_s5, %s1697_s21  ;;  %s374_s9 = scalar_lea.vmem [#allocation11], %s1686_s16 }
  0x79   : > { %s383_s25 = sshll.u32 %s374_s9, 4  ;;  %s371_s11 = scalar_lea.sflag [#allocation12], %s1638_s17  ;;  %s384_s25 = int_to_ptr.vmem [resolvable:$true] %s383_s25 }
  0x7a   : > { %s1383_s1 = scalar_lea.vmem %s384_s25, 48  ;;  %s1518_s27 = smov [#allocation11]  }
  0x7b   : > { %p1384_p7 = scmp.ne.s32.totalorder %s384_s25, %s1383_s1  ;;  %s1388_s28 = sshll.u32 %s1518_s27, 4  ;;  %s1389_s28 = int_to_ptr.vmem [resolvable:$false] %s1388_s28 }
  0x7c   : > { %s1390_s26 = scalar_lea.vmem %s1389_s28, 96  ;;  %p1391_p13 = scmp.lt.s32.totalorder %s384_s25, %s1389_s28 }
  0x7d   : > { %p1386_p10 = pnand %p1384_p7, %p1672_p2  ;;  %p1392_p1 = scmp.lt.s32.totalorder %s1390_s26, %s1383_s1 }
  0x7f   : > { %p1387_p11 = pneg %p1386_p10  ;;  %p1393_p4 = por %p1392_p1, %p1391_p13 }
  0x81   : > { %p1394_p5 = pnand %p1393_p4, %p1387_p11 }
  0x83   : > { %1397 = shalt.err (!%p1394_p5)
}
  0x84   : > { %1140 = dma.hbm_to_vmem [thread:$0]  (!%p1646_p0), %s382_s10, 48, %s384_s25, %s371_s11, %s1513_s6, %s1513_s6, %s1514_s13  }
  0x85   : > { %395 = sbr.rel (%p1691_p3) target bundleno = 569 (0x239), region = 44  ;;  %s1783_s21 = sand.u32 (!%p1691_p3), 1, %s1482_s22  }
  0x86   : > { %s1104_s17 = smul.u32 (!%p1691_p3), 24, %s1783_s21  ;;  %s398_s30 = scalar_lea.sflag (!%p1691_p3), [#allocation3], %s1783_s21 }
  0x88   : > { %s1787_s14 = scalar_lea.vmem (!%p1691_p3), [#allocation2], %s1104_s17 }
  0x8a   : > { %1457 = dma.done.wait (%p1622_p8), %s398_s30, 384  }
  0x8b   : > { %1459 = vsyncadd (%p1622_p8), %s398_s30, 4294966912  ;;  %s2098_s20 = sld [smem:[#allocation26_spill]]  ;;  %s1794_s6 = scalar_lea.vmem [#allocation5], %s1104_s17 }
  0x91   : > { %s406_s16 = sand.u32 1, %s2098_s20  }
  0x92   : > { %s407_s8 = scalar_lea.sflag [#allocation6], %s406_s16 }
  0x93   : > { %1461 = dma.done.wait (%p1622_p8), %s407_s8, 432  }
  0x94   : > { %1463 = vsyncadd (%p1622_p8), %s407_s8, 4294966864  ;;  %s1105_s13 = smul.u32 3, %s1783_s21  ;;  %s425_s3 = scalar_lea.sflag [#allocation9], %s406_s16 }
  0x96   : > { %s1801_s24 = scalar_lea.vmem [#allocation7], %s1105_s13  ;;  %s1803_s19 = scalar_lea.vmem [#allocation8], %s1105_s13 }
  0x97   : > { %1465 = dma.done.wait (%p1622_p8), %s425_s3, 96  }
  0x98   : > { %1467 = vsyncadd (%p1622_p8), %s425_s3, 4294967200  ;;  %s1809_s18 = scalar_lea.vmem [#allocation10], %s1105_s13  ;;  %s443_s23 = scalar_lea.sflag [#allocation12], %s1783_s21 }
  0x99   : > { %s1812_s15 = scalar_lea.vmem [#allocation11], %s1105_s13 }
  0x9a   : > { %1469 = dma.done.wait (%p1622_p8), %s443_s23, 48  }
  0x9b   : > { %1471 = vsyncadd (%p1622_p8), %s443_s23, 4294967248  ;;  %v500_v0 = vlaneseq  ;;  %v666_v2 = vld [vmem:[%s1794_s6] sm:$0xff]  ;;  %v508_v7 = vld [vmem:[%s1787_s14] sm:$0xff]  ;;  %s1519_s12 = smov 1   ;;  %s1520_s7 = smov 127  }
  0x9c   : > { %v1077_v3 = vld [vmem:[%s1809_s18] ss:$0 sm:$0xff]  ;;  %v1080_v4 = vld [vmem:[%s1812_s15] ss:$0 sm:$0xff]  ;;  %v675_v5 = vrot.slane %v666_v2, 7  ;;  %v699_v6 = vrot.slane %v666_v2, 1 }
  0x9d   : > { %v1819_v1 = vshrl.u32 %v500_v0, 7  ;;  %v1071_v8 = vld [vmem:[%s1801_s24] ss:$0 sm:$0xff]  ;;  %v667_v9 = vld [vmem:[%s1794_s6 + $0x8] sm:$0xff]  ;;  %v1074_v10 = vld [vmem:[%s1803_s19] ss:$0 sm:$0xff] }
  0x9e   : > { %v517_v11 = vrot.slane %v508_v7, 7  ;;  %v543_v12 = vrot.slane %v508_v7, 1  ;;  %v1078_v13 = vld [vmem:[%s1809_s18 + $0x1] ss:$0 sm:$0xff]  ;;  %v1081_v16 = vld [vmem:[%s1812_s15 + $0x1] ss:$0 sm:$0xff] }
  0x9f   : > { %vm504_vm0 = vcmp.eq.s32.totalorder %v1819_v1, 0  ;;  %vm505_vm1 = vcmp.eq.s32.totalorder %v1819_v1, 7  ;;  %v676_v17 = vrot.slane %v667_v9, 7  ;;  %v700_v18 = vrot.slane %v667_v9, 1  ;;  %v509_v19 = vld [vmem:[%s1787_s14 + $0x8] sm:$0xff]  ;;  %v510_v38 = vld [vmem:[%s1787_s14 + $0x10] sm:$0xff] }
  0xa0   : > { %v696_v14 = vsel %vm504_vm0, %v1077_v3, %v675_v5  ;;  %v720_v15 = vsel %vm505_vm1, %v1080_v4, %v699_v6  ;;  %v540_v21 = vsel %vm504_vm0, %v1071_v8, %v517_v11  ;;  %v566_v22 = vsel %vm505_vm1, %v1074_v10, %v543_v12  ;;  %v1072_v23 = vld [vmem:[%s1801_s24 + $0x1] ss:$0 sm:$0xff]  ;;  %v1075_v24 = vld [vmem:[%s1803_s19 + $0x1] ss:$0 sm:$0xff]  ;;  %v1073_v43 = vld [vmem:[%s1801_s24 + $0x2] ss:$0 sm:$0xff] }
  0xa1   : > { %v1837_v20 = vsub.f32 %v720_v15, %v696_v14  ;;  %v518_v25 = vrot.slane %v509_v19, 7  ;;  %v1845_v26 = vsub.f32 %v566_v22, %v540_v21  ;;  %v697_v27 = vsel %vm504_vm0, %v1078_v13, %v676_v17  ;;  %v1076_v44 = vld [vmem:[%s1803_s19 + $0x2] ss:$0 sm:$0xff]  ;;  %v668_v51 = vld [vmem:[%s1794_s6 + $0x10] sm:$0xff]  ;;  %v1079_v56 = vld [vmem:[%s1809_s18 + $0x2] ss:$0 sm:$0xff] }
  0xa2   : > { %v721_v28 = vsel %vm505_vm1, %v1081_v16, %v700_v18  ;;  %v544_v29 = vrot.slane %v509_v19, 1  ;;  %v570_v32 = vmul.f32 2.0, %v509_v19  ;;  %v569_v33 = vmul.f32 2.0, %v508_v7  ;;  %v1082_v57 = vld [vmem:[%s1812_s15 + $0x2] ss:$0 sm:$0xff]  ;;  %s2099_s29 = sld [smem:[#allocation22_spill]] }
  0xa3   : > { %753 = vrot.lane.b32.xlu1 %v1837_v20, %s1519_s12  ;;  %v1853_v30 = vsub.f32 %v721_v28, %v697_v27  ;;  %v541_v31 = vsel %vm504_vm0, %v1072_v23, %v518_v25  ;;  %603 = vrot.lane.b32.xlu0 %v1845_v26, %s1519_s12  ;;  %v519_v41 = vrot.slane %v510_v38, 7  ;;  %v545_v42 = vrot.slane %v510_v38, 1  ;;  %s2100_s10 = sld [smem:[#allocation21_spill]]  ;;  %s1070_s25 = sshll.u32 %s1783_s21, 3 }
  0xa4   : > { %v567_v34 = vsel %vm505_vm1, %v1075_v24, %v544_v29  ;;  %v573_v36 = vadd.f32 %v570_v32, %v541_v31  ;;  %v572_v37 = vadd.f32 %v569_v33, %v540_v21  ;;  %v723_v45 = vmul.f32 2.0, %v666_v2  ;;  %s499_s27 = scalar_lea.vmem [#allocation13], %s1070_s25  ;;  %s2102_s20 = sld [smem:[#allocation34_spill]] }
  0xa5   : > { %v1861_v35 = vsub.f32 %v567_v34, %v541_v31  ;;  %v542_v46 = vsel %vm504_vm0, %v1073_v43, %v519_v41  ;;  %v568_v47 = vsel %vm505_vm1, %v1076_v44, %v545_v42  ;;  %v724_v50 = vmul.f32 2.0, %v667_v9  ;;  %s851_s28 = sshll.u32 %s499_s27, 4  ;;  %s836_s8 = scalar_lea.sflag [#allocation4], %s1783_s21  ;;  %s1988_s28 = int_to_ptr.vmem [resolvable:$true] %s851_s28 }
  0xa6   : > { %v576_v39 = vadd.f32 %v573_v36, %v567_v34  ;;  %v575_v40 = vadd.f32 %v572_v37, %v566_v22  ;;  %v726_v48 = vadd.f32 %v723_v45, %v696_v14  ;;  %v580_v49 = vsub.f32 %v568_v47, %v542_v46  ;;  %s1398_s6 = scalar_lea.vmem %s1988_s28, 128  ;;  %s1521_s13 = smov [#allocation13]  }
  0xa7   : > { %755 = vrot.lane.b32.xlu1 %v1853_v30, %s1519_s12  ;;  %605 = vrot.lane.b32.xlu0 %v1861_v35, %s1519_s12  ;;  %v727_v53 = vadd.f32 %v724_v50, %v697_v27  ;;  %v677_v54 = vrot.slane %v668_v51, 7  ;;  %v701_v55 = vrot.slane %v668_v51, 1  ;;  %v571_v62 = vmul.f32 2.0, %v510_v38  ;;  %p1399_p8 = scmp.ne.s32.totalorder %s1988_s28, %s1398_s6  ;;  %s1402_s24 = sshll.u32 %s1521_s13, 4  ;;  %s1403_s24 = int_to_ptr.vmem [resolvable:$false] %s1402_s24 }
  0xa8   : > { %v729_v52 = vadd.f32 %v726_v48, %v720_v15  ;;  %v725_v2 = vmul.f32 2.0, %v668_v51  ;;  %v1910_v5 = vand.u32 127, %v500_v0  ;;  %v774_v6 = vmul.f32 2.0, %v1837_v20  ;;  %s1084_s11 = sshll.u32 %s2099_s29, 1  ;;  %s1404_s3 = scalar_lea.vmem %s1403_s24, 256 }
  0xa9   : > { %v730_v58 = vadd.f32 %v727_v53, %v721_v28  ;;  %v698_v59 = vsel %vm504_vm0, %v1079_v56, %v677_v54  ;;  %v722_v60 = vsel %vm505_vm1, %v1082_v57, %v701_v55  ;;  %v574_v63 = vadd.f32 %v571_v62, %v542_v46  ;;  %s847_s1 = sadd.s32 %s2100_s10, %s1084_s11  ;;  %p1400_p0 = pnand %p1399_p8, %p1626_p9 }
  0xaa   : > { %v1892_v61 = vsub.f32 %v722_v60, %v698_v59  ;;  %v728_v1 = vadd.f32 %v725_v2, %v698_v59  ;;  %vm506_vm2 = vcmp.eq.s32.totalorder %v1910_v5, 0  ;;  %v624_v7 = vmul.f32 2.0, %v1845_v26  ;;  %s1085_s26 = sshll.u32 %s847_s1, 7  ;;  %p1405_p3 = scmp.lt.s32.totalorder %s1988_s28, %s1403_s24 }
  0xab   : > { %583 = vrot.lane.b32.xlu1 %v576_v39, %s1519_s12  ;;  %581 = vrot.lane.b32.xlu0 %v575_v40, %s1519_s12  ;;  %v577_v3 = vadd.f32 %v574_v63, %v568_v47  ;;  %v775_v13 = vmul.f32 2.0, %v1853_v30  ;;  %v625_v0 = vmul.f32 2.0, %v1861_v35  ;;  %vm507_vm3 = vcmp.eq.s32.totalorder %v1910_v5, 127  ;;  %s849_s16 = scalar_lea.hbm %s2102_s20, %s1085_s26  ;;  %p1401_p2 = pneg %p1400_p0 }
  0xac   : > { %v731_v4 = vadd.f32 %v728_v1, %v722_v60  ;;  %v626_v27 = vmul.f32 2.0, %v580_v49  ;;  %p1406_p6 = scmp.lt.s32.totalorder %s1404_s3, %s1398_s6 }
  0xae   : > { %p1407_p7 = por %p1406_p6, %p1405_p3 }
  0xaf   : > { %594 = vrot.lane.b32.xlu1 %v576_v39, %s1520_s7  ;;  %592 = vrot.lane.b32.xlu0 %v575_v40, %s1520_s7 }
  0xb0   : > { %p1408_p10 = pnand %p1407_p7, %p1401_p2 }
  0xb3   : > { %612 = vrot.lane.b32.xlu1 %v1845_v26, %s1520_s7  ;;  %607 = vrot.lane.b32.xlu0 %v580_v49, %s1519_s12 }
  0xb7   : > { %735 = vrot.lane.b32.xlu1 %v729_v52, %s1519_s12  ;;  %614 = vrot.lane.b32.xlu0 %v1861_v35, %s1520_s7 }
  0xbb   : > { %744 = vrot.lane.b32.xlu1 %v729_v52, %s1520_s7  ;;  %737 = vrot.lane.b32.xlu0 %v730_v58, %s1519_s12 }
  0xbf   : > { %757 = vrot.lane.b32.xlu1 %v1892_v61, %s1519_s12  ;;  %746 = vrot.lane.b32.xlu0 %v730_v58, %s1520_s7 }
  0xc3   : > { %764 = vrot.lane.b32.xlu1 %v1853_v30, %s1520_s7  ;;  %762 = vrot.lane.b32.xlu0 %v1837_v20, %s1520_s7 }
  0xc7   : > { %596 = vrot.lane.b32.xlu1 %v577_v3, %s1520_s7  ;;  %585 = vrot.lane.b32.xlu0 %v577_v3, %s1519_s12 }
  0xcb   : > { %739 = vrot.lane.b32.xlu1 %v731_v4, %s1519_s12  ;;  %616 = vrot.lane.b32.xlu0 %v580_v49, %s1520_s7  ;;  %v776_v49 = vmul.f32 2.0, %v1892_v61 }
  0xcf   : > { %766 = vrot.lane.b32.xlu1 %v1892_v61, %s1520_s7  ;;  %748 = vrot.lane.b32.xlu0 %v731_v4, %s1520_s7 }
 0x115   : > { %v754_v8 = vpop.permute.xlu1 %753  ;;  %v604_v10 = vpop.permute.xlu0 %603 }
 0x116   : > { %v759_v9 = vsel %vm506_vm2, 0.0, %v754_v8  ;;  %v609_v12 = vsel %vm506_vm2, 0.0, %v604_v10 }
 0x117   : > { %v777_v11 = vadd.f32 %v774_v6, %v759_v9  ;;  %v627_v14 = vadd.f32 %v624_v7, %v609_v12 }
 0x119   : > { %v756_v15 = vpop.permute.xlu1 %755  ;;  %v606_v17 = vpop.permute.xlu0 %605 }
 0x11a   : > { %v760_v16 = vsel %vm506_vm2, 0.0, %v756_v15  ;;  %v610_v19 = vsel %vm506_vm2, 0.0, %v606_v17 }
 0x11b   : > { %v778_v18 = vadd.f32 %v775_v13, %v760_v16  ;;  %v628_v20 = vadd.f32 %v625_v0, %v610_v19 }
 0x11d   : > { %v584_v21 = vpop.permute.xlu1 %583  ;;  %v582_v22 = vpop.permute.xlu0 %581 }
 0x11e   : > { %v589_v26 = vsel %vm506_vm2, 0.0, %v582_v22  ;;  %v590_v36 = vsel %vm506_vm2, 0.0, %v584_v21 }
 0x121   : > { %v595_v23 = vpop.permute.xlu1 %594  ;;  %v593_v24 = vpop.permute.xlu0 %592 }
 0x122   : > { %v600_v25 = vsel %vm507_vm3, 0.0, %v593_v24  ;;  %v601_v32 = vsel %vm507_vm3, 0.0, %v595_v23 }
 0x123   : > { %v621_v28 = vsub.f32 %v600_v25, %v589_v26  ;;  %v622_v40 = vsub.f32 %v601_v32, %v590_v36 }
 0x125   : > { %v613_v29 = vpop.permute.xlu1 %612  ;;  %v608_v31 = vpop.permute.xlu0 %607  ;;  %v633_v37 = vmul.f32 %v621_v28, %v621_v28  ;;  %v634_v46 = vmul.f32 %v622_v40, %v622_v40 }
 0x126   : > { %v618_v30 = vsel %vm507_vm3, 0.0, %v613_v29  ;;  %v611_v34 = vsel %vm506_vm2, 0.0, %v608_v31 }
 0x127   : > { %v630_v33 = vadd.f32 %v627_v14, %v618_v30  ;;  %v629_v35 = vadd.f32 %v626_v27, %v611_v34 }
 0x129   : > { %v636_v38 = vmul.f32 %v630_v33, %v630_v33  ;;  %v736_v39 = vpop.permute.xlu1 %735  ;;  %v615_v41 = vpop.permute.xlu0 %614 }
 0x12a   : > { %v619_v43 = vsel %vm507_vm3, 0.0, %v615_v41  ;;  %v741_v58 = vsel %vm506_vm2, 0.0, %v736_v39 }
 0x12b   : > { %v639_v42 = vadd.f32 %v636_v38, %v633_v37  ;;  %v631_v44 = vadd.f32 %v628_v20, %v619_v43 }
 0x12d   : > { %v745_v45 = vpop.permute.xlu1 %744  ;;  %v637_v47 = vmul.f32 %v631_v44, %v631_v44  ;;  %v738_v48 = vpop.permute.xlu0 %737  ;;  %v1953_v62 = vadd.f32 1e-06, %v639_v42 }
 0x12e   : > { %v750_v54 = vsel %vm507_vm3, 0.0, %v745_v45  ;;  %v742_v57 = vsel %vm506_vm2, 0.0, %v738_v48 }
 0x12f   : > { %v640_v50 = vadd.f32 %v637_v47, %v634_v46  ;;  %v771_v63 = vsub.f32 %v750_v54, %v741_v58  ;;  %vm647_vm4 = vcmp.eq.f32.partialorder %v1953_v62, inf  ;;  %vm649_vm5 = vcmp.eq.f32.partialorder %v1953_v62, 0.0 }
 0x130   : > { %v650_v5 = vand.u32 2147483648, %v1953_v62 }
 0x131   : > { %v758_v51 = vpop.permute.xlu1 %757  ;;  %v747_v53 = vpop.permute.xlu0 %746  ;;  %v1951_v59 = vadd.f32 1e-06, %v640_v50  ;;  %v783_v10 = vmul.f32 %v771_v63, %v771_v63 }
 0x132   : > { %v761_v52 = vsel %vm506_vm2, 0.0, %v758_v51  ;;  %v751_v56 = vsel %vm507_vm3, 0.0, %v747_v53 }
 0x133   : > { %v779_v55 = vadd.f32 %v776_v49, %v761_v52  ;;  %v772_v60 = vsub.f32 %v751_v56, %v742_v57  ;;  %1218 = vrsqrt.f32 %v1951_v59  ;;  %vm654_vm6 = vcmp.eq.f32.partialorder %v1951_v59, inf }
 0x134   : > { %1220 = vrsqrt.f32 %v1953_v62  ;;  %vm656_vm7 = vcmp.eq.f32.partialorder %v1951_v59, 0.0  ;;  %v657_v45 = vand.u32 2147483648, %v1951_v59 }
 0x135   : > { %v765_v61 = vpop.permute.xlu1 %764  ;;  %v763_v3 = vpop.permute.xlu0 %762  ;;  %v784_v7 = vmul.f32 %v772_v60, %v772_v60 }
 0x136   : > { %v769_v2 = vsel %vm507_vm3, 0.0, %v765_v61  ;;  %v768_v4 = vsel %vm507_vm3, 0.0, %v763_v3 }
 0x137   : > { %v781_v1 = vadd.f32 %v778_v18, %v769_v2  ;;  %v780_v6 = vadd.f32 %v777_v11, %v768_v4 }
 0x139   : > { %v787_v8 = vmul.f32 %v781_v1, %v781_v1  ;;  %v597_v9 = vpop.permute.xlu1 %596  ;;  %v786_v12 = vmul.f32 %v780_v6, %v780_v6  ;;  %v586_v13 = vpop.permute.xlu0 %585 }
 0x13a   : > { %v602_v0 = vsel %vm507_vm3, 0.0, %v597_v9  ;;  %v591_v15 = vsel %vm506_vm2, 0.0, %v586_v13 }
 0x13b   : > { %v790_v14 = vadd.f32 %v787_v8, %v784_v7  ;;  %v789_v16 = vadd.f32 %v786_v12, %v783_v10  ;;  %v623_v19 = vsub.f32 %v602_v0, %v591_v15 }
 0x13d   : > { %v793_v17 = vadd.f32 1e-06, %v790_v14  ;;  %v740_v11 = vpop.permute.xlu1 %739  ;;  %v792_v18 = vadd.f32 1e-06, %v789_v16  ;;  %v617_v20 = vpop.permute.xlu0 %616  ;;  %v635_v24 = vmul.f32 %v623_v19, %v623_v19 }
 0x13e   : > { %v620_v21 = vsel %vm507_vm3, 0.0, %v617_v20  ;;  %v743_v28 = vsel %vm506_vm2, 0.0, %v740_v11 }
 0x13f   : > { %1222 = vrsqrt.f32 %v793_v17  ;;  %v632_v22 = vadd.f32 %v629_v35, %v620_v21  ;;  %vm804_vm8 = vcmp.eq.f32.partialorder %v793_v17, inf  ;;  %v807_v49 = vand.u32 2147483648, %v793_v17 }
 0x140   : > { %1224 = vrsqrt.f32 %v792_v18  ;;  %v1219_v34 = vpop.eup %1218  ;;  %vm797_vm9 = vcmp.eq.f32.partialorder %v792_v18, inf  ;;  %v800_v50 = vand.u32 2147483648, %v792_v18  ;;  %vm806_vm10 = vcmp.eq.f32.partialorder %v793_v17, 0.0 }
 0x141   : > { %v767_v23 = vpop.permute.xlu1 %766  ;;  %v638_v25 = vmul.f32 %v632_v22, %v632_v22  ;;  %v749_v27 = vpop.permute.xlu0 %748  ;;  %v653_v39 = vmul.f32 %v1219_v34, %v1951_v59  ;;  %vm799_vm11 = vcmp.eq.f32.partialorder %v792_v18, 0.0 }
 0x142   : > { %v770_v26 = vsel %vm507_vm3, 0.0, %v767_v23  ;;  %v752_v30 = vsel %vm507_vm3, 0.0, %v749_v27  ;;  %v1221_v37 = vpop.eup %1220 }
 0x143   : > { %v782_v29 = vadd.f32 %v779_v55, %v770_v26  ;;  %v641_v31 = vadd.f32 %v638_v25, %v635_v24  ;;  %v773_v32 = vsub.f32 %v752_v30, %v743_v28  ;;  %v646_v41 = vmul.f32 %v1221_v37, %v1953_v62 }
 0x144   : > { %v655_v44 = vsel %vm654_vm6, %v1951_v59, %v653_v39 }
 0x145   : > { %v788_v33 = vmul.f32 %v782_v29, %v782_v29  ;;  %v644_v36 = vadd.f32 1e-06, %v641_v31  ;;  %v785_v35 = vmul.f32 %v773_v32, %v773_v32  ;;  %v648_v47 = vsel %vm647_vm4, %v1953_v62, %v646_v41 }
 0x146   : > { %v658_v52 = vsel %vm656_vm7, %v657_v45, %v655_v44  ;;  %v651_v55 = vsel %vm649_vm5, %v650_v5, %v648_v47 }
 0x147   : > { %1226 = vrsqrt.f32 %v644_v36  ;;  %v791_v38 = vadd.f32 %v788_v33, %v785_v35  ;;  %vm661_vm12 = vcmp.eq.f32.partialorder %v644_v36, inf  ;;  %v664_v6 = vand.u32 2147483648, %v644_v36 }
 0x148   : > { %vm663_vm14 = vcmp.eq.f32.partialorder %v644_v36, 0.0 }
 0x149   : > { %v794_v40 = vadd.f32 1e-06, %v791_v38 }
 0x14b   : > { %1228 = vrsqrt.f32 %v794_v40  ;;  %vm811_vm13 = vcmp.eq.f32.partialorder %v794_v40, inf  ;;  %v814_v7 = vand.u32 2147483648, %v794_v40  ;;  %vm813_vm15 = vcmp.eq.f32.partialorder %v794_v40, 0.0 }
 0x14c   : > { %v1223_v42 = vpop.eup %1222 }
 0x14d   : > { %v1225_v43 = vpop.eup %1224  ;;  %v803_v46 = vmul.f32 %v1223_v42, %v793_v17 }
 0x14e   : > { %v796_v48 = vmul.f32 %v1225_v43, %v792_v18 }
 0x14f   : > { %v805_v51 = vsel %vm804_vm8, %v793_v17, %v803_v46 }
 0x150   : > { %v798_v53 = vsel %vm797_vm9, %v792_v18, %v796_v48  ;;  %v808_v54 = vsel %vm806_vm10, %v807_v49, %v805_v51 }
 0x151   : > { %v801_v56 = vsel %vm799_vm11, %v800_v50, %v798_v53  ;;  %v817_v57 = vsub.f32 %v658_v52, %v808_v54 }
 0x152   : > { %v816_v58 = vsub.f32 %v651_v55, %v801_v56 }
 0x153   : > { %v820_v59 = vand.u32 2147483647, %v817_v57 }
 0x154   : > { %v819_v60 = vand.u32 2147483647, %v816_v58  ;;  %v1227_v61 = vpop.eup %1226 }
 0x155   : > { %v660_v63 = vmul.f32 %v1227_v61, %v644_v36 }
 0x156   : > { %v822_v2 = vadd.f32 %v820_v59, %v819_v60 }
 0x157   : > { %v662_v1 = vsel %vm661_vm12, %v644_v36, %v660_v63 }
 0x158   : > { %v1229_v3 = vpop.eup %1228  ;;  %v665_v62 = vsel %vm663_vm14, %v664_v6, %v662_v1 }
 0x159   : > { %v810_v4 = vmul.f32 %v1229_v3, %v794_v40 }
 0x15b   : > { %v812_v8 = vsel %vm811_vm13, %v794_v40, %v810_v4 }
 0x15c   : > { %v815_v9 = vsel %vm813_vm15, %v814_v7, %v812_v8 }
 0x15d   : > { %v818_v10 = vsub.f32 %v665_v62, %v815_v9 }
 0x15f   : > { %v821_v12 = vand.u32 2147483647, %v818_v10 }
 0x161   : > { %v823_v13 = vadd.f32 %v822_v2, %v821_v12 }
 0x163   : > { %824 = vadd.xlane.f32.xlu0 %v823_v13 }
 0x1ec   : > { %v825_v14 = vpop.xlane.xlu0 %824 }
 0x1ed   : > { %v826_v0 = vrot.slane %v825_v14, 4 }
 0x1ef   : > { %v827_v15 = vadd.f32 %v826_v0, %v825_v14 }
 0x1f1   : > { %v828_v16 = vrot.slane %v827_v15, 2 }
 0x1f3   : > { %v829_v17 = vadd.f32 %v828_v16, %v827_v15 }
 0x1f5   : > { %v830_v11 = vrot.slane %v829_v17, 1 }
 0x1f7   : > { %v831_v18 = vadd.f32 %v830_v11, %v829_v17 }
 0x1f9   : > { %1106 = vpush %v831_v18 }
 0x22a   : > { %s1107_s17 = spop %1106 }
 0x22b   : > { %v833_v19 = vstv %s1107_s17 }
 0x22c   : > { %834 = vst [vmem:[%s499_s27] sm:$0xff] %v833_v19 }
 0x22d   : > { %1411 = shalt.err (!%p1408_p10)
}
 0x22e   : > { %s1412_s19 = scalar_lea.hbm %s849_s16, 128  ;;  %s1416_s23 = scalar_lea.hbm %s2102_s20, 512 }
 0x22f   : > { %p1413_p11 = scmp.ne.s32.totalorder %s849_s16, %s1412_s19  ;;  %p1417_p4 = scmp.lt.s32.totalorder %s849_s16, %s2102_s20 }
 0x230   : > { %p1418_p5 = scmp.lt.s32.totalorder %s1416_s23, %s1412_s19 }
 0x231   : > { %p1414_p13 = pnand %p1413_p11, %p1626_p9 }
 0x232   : > { %p1419_p8 = por %p1418_p5, %p1417_p4 }
 0x233   : > { %p1415_p1 = pneg %p1414_p13 }
 0x235   : > { %p1420_p0 = pnand %p1419_p8, %p1415_p1 }
 0x237   : > { %1423 = shalt.err (!%p1420_p0)
}
 0x238   : > { %1120 = dma.vmem_to_hbm [thread:$0]  (%p1626_p9), %s1988_s28, 128, %s849_s16, %s836_s8  }
 0x239 PF: > { %s2103_s7 = sld [smem:[#allocation25_spill]] }
 0x23a   : > { %s2104_s29 = sld [smem:[#allocation19_spill]] }
 0x23f   : > { %p1146_p2 = scmp.ge.s32.totalorder %s2103_s7, 2 }
 0x240   : > { %s863_s25 = sand.u32 1, %s2104_s29  }
 0x241   : > { %p1142_p3 = pnand %p1146_p2, %p1632_p12  ;;  %s864_s11 = scalar_lea.sflag [#allocation4], %s863_s25 }
 0x243   : > { %p1143_p6 = pneg %p1142_p3 }
 0x245   : > { %1473 = dma.done.wait (%p1143_p6), %s864_s11, 128  }
 0x246   : > { %1475 = vsyncadd (%p1143_p6), %s864_s11, 4294967168  ;;  %s31_s28 = sadd.s32 1, %s2103_s7   ;;  %s2106_s1 = sld [smem:[#allocation20_spill]] }
 0x247   : > { %p28_p7 = scmp.ge.s32.totalorder %s31_s28, 6   ;;  %s2107_s23 = sld [smem:[#allocation31_spill]] }
 0x248   : > { %s2108_s24 = sld [smem:[#allocation23_spill]]  ;;  %s2112_s21 = smov %s1482_s22 }
 0x249   : > { %s2109_s25 = sld [smem:[#allocation24_spill]]  ;;  %30 = sbr.rel (!%p28_p7) target bundleno = 17 (0x11), region = 150 }
 0x24a   : > { %s2110_s26 = sld [smem:[#allocation27_spill]] }
 0x24b   : > { %s2111_s27 = sld [smem:[#allocation28_spill]] }
 0x24c   : > { %s2113_s22 = smov %s2106_s1 }
 0x24e   :  { %869 = vsyncpa [#allocation3], 1 }
 0x24f   :  { %871 = vsyncpa [#allocation3 + $0x1], 1 }
 0x250   :  { %872 = vsyncpa [#allocation6], 1 }
 0x251   :  { %874 = vsyncpa [#allocation6 + $0x1], 1 }
 0x252   :  { %875 = vsyncpa [#allocation9], 1 }
 0x253   :  { %877 = vsyncpa [#allocation9 + $0x1], 1 }
 0x254   :  { %878 = vsyncpa [#allocation12], 1 }
 0x255   :  { %880 = vsyncpa [#allocation12 + $0x1], 1 }
 0x256   :  { %881 = vsyncpa [#allocation4], 1 }
 0x257   :  { %883 = vsyncpa [#allocation4 + $0x1], 1 }

</bundles_post_ra>
